<compile_context>
chip_gen: v5e
topology: v5e:2x2
jax: 0.10.0
libtpu: 0.0.40
codegen_flags: <defaults>
</compile_context>

<pallas_src>
import math

import jax
import jax.numpy as jnp
from jax.experimental import pallas as pl
from jax.experimental.pallas import tpu as pltpu

# ---- synthetic NllbMoeConfig-like constants (small shapes) -------------------
D_MODEL = 32          # config.d_model
FFN_DIM = 64          # ffn_dim
NUM_EXPERTS = 8       # config.num_experts
BATCH = 2
SEQ = 8
MOE_EVAL_CAPACITY_TOKEN_FRACTION = 1.0   # NllbMoeConfig default (eval mode)
NORMALIZE_BEFORE_DROPPING = False        # NllbMoeConfig default
# TODO(synk): expert_executor.dispatch_local's internal eval-time
# (1 - moe_token_dropout) scaling is not visible in the given forward; keep the
# hook but use 0.0 so it is a no-op (and statically skipped in the kernel).
MOE_TOKEN_DROPOUT = 0.0

LANE = 128


def _round_up(x, m):
    return ((x + m - 1) // m) * m


# =============================== Pallas kernel ================================

def _fused_moe_kernel(x_ref, gates_ref, w1c_ref, b1c_ref, selb2_ref, w2c_ref, o_ref):
    """Fused top-2 MoE FFN over all experts in one lane-dense contraction.

    x_ref     : (tt, Hp)        padded tokens, f32
    gates_ref : (tt, GP)        combining weights, lane-padded E -> GP=128, f32
    w1c_ref   : (Hp, E*F)       experts' fc1 weights concatenated along F, bf16
    b1c_ref   : (1,  E*F)       experts' fc1 biases concatenated, f32
    selb2_ref : (GP, E*F + Hp)  [F-repeat selector | fc2 biases], f32
    w2c_ref   : (E*F, Hp)       experts' fc2 weights stacked on the contraction, bf16
    o_ref     : (tt, Hp)        output (padded), f32

    Gating is linear, so applying the per-(token, expert) gate to the hidden
    activations before the fc2 contraction is exactly
        sum_e gate[t,e] * (relu(x w1_e + b1_e) w2_e + b2_e)
    i.e. the PyTorch gather/scatter per-expert loop.
    """
    EF = w1c_ref.shape[1]
    x = x_ref[...]                                                    # (tt, Hp) f32

    # fc1 over all experts: bf16 MXU operands, f32 accumulation.
    h = jnp.dot(x.astype(jnp.bfloat16), w1c_ref[...],
                preferred_element_type=jnp.float32)                   # (tt, EF)
    h = jnp.maximum(h + b1c_ref[...], 0.0)                            # NLLB act == relu

    # One tiny K=GP f32 matmul rebuilds both the gate broadcast across F
    # (via the 0/1 selector block) and the gated fc2 bias (via the b2 block).
    aux = jnp.dot(gates_ref[...], selb2_ref[...],
                  preferred_element_type=jnp.float32)                 # (tt, EF+Hp)
    gate_rep = aux[:, :EF]                                            # (tt, EF)
    gated_b2 = aux[:, EF:]                                            # (tt, Hp)

    hg = (h * gate_rep).astype(jnp.bfloat16)                          # gate mul in f32
    y = jnp.dot(hg, w2c_ref[...], preferred_element_type=jnp.float32) + gated_b2

    if MOE_TOKEN_DROPOUT != 0.0:   # statically skipped when 0
        y = y * (1.0 - MOE_TOKEN_DROPOUT)

    # next_states[next_states == 0] = hidden_states[next_states == 0]
    # (faithful to the PyTorch exact-zero test; padded columns stay 0 -> 0)
    o_ref[...] = jnp.where(y == 0.0, x, y)


def fused_moe(x_pad, gates_pad, w1c, b1c, selb2, w2c, *, token_tile=None):
    T, Hp = x_pad.shape
    GP = gates_pad.shape[1]
    EF = w1c.shape[1]
    if token_tile is None:
        # >= 2 grid steps so v7x's second TensorCore picks up half the tokens.
        # TODO(synk): at production sequence lengths use 256-512-token tiles.
        token_tile = T // 2 if (T % 16 == 0) else T
    tt = token_tile
    assert T % tt == 0 and tt % 8 == 0

    return pl.pallas_call(
        _fused_moe_kernel,
        out_shape=jax.ShapeDtypeStruct((T, Hp), jnp.float32),
        grid=(T // tt,),
        in_specs=[
            pl.BlockSpec((tt, Hp), lambda i: (i, 0)),        # tokens (padded), f32
            pl.BlockSpec((tt, GP), lambda i: (i, 0)),        # combining weights (lane-dense)
            pl.BlockSpec((Hp, EF), lambda i: (0, 0)),        # fc1 weights (all experts), bf16
            pl.BlockSpec((1, EF), lambda i: (0, 0)),         # fc1 biases, f32
            pl.BlockSpec((GP, EF + Hp), lambda i: (0, 0)),   # [selector | fc2 bias], f32
            pl.BlockSpec((EF, Hp), lambda i: (0, 0)),        # fc2 weights (all experts), bf16
        ],
        out_specs=pl.BlockSpec((tt, Hp), lambda i: (i, 0)),
        compiler_params=pltpu.CompilerParams(
            dimension_semantics=("parallel",),               # token tiles -> both TCs on v7x
            vmem_limit_bytes=32 * 1024 * 1024),              # raise v5e's 16 MiB default
    )(x_pad, gates_pad, w1c, b1c, selb2, w2c)


# ====================== routing glue (NllbMoeTop2Router) ======================

def _normalize_router_probabilities(router_probs, top_1_mask, top_2_mask):
    top_1_max = jnp.sum(router_probs * top_1_mask, axis=1)
    top_2_max = jnp.sum(router_probs * top_2_mask, axis=1)
    denom = jnp.maximum(top_1_max + top_2_max, jnp.finfo(jnp.float32).eps)
    return top_1_max / denom, top_2_max / denom


def route_tokens(router_logits, router_probs, num_experts, padding_mask=None):
    """Eval-mode NllbMoeTop2Router.route_tokens with default config:
    second_expert_policy='all', batch_prioritized_routing=False."""
    nb_tokens = router_logits.shape[0]

    top_1_idx = jnp.argmax(router_probs, axis=-1)
    top_1_mask = jax.nn.one_hot(top_1_idx, num_experts, dtype=jnp.float32)

    logits_except_top_1 = jnp.where(top_1_mask > 0, -jnp.inf, router_logits)
    top_2_idx = jnp.argmax(logits_except_top_1, axis=-1)
    top_2_mask = jax.nn.one_hot(top_2_idx, num_experts, dtype=jnp.float32)

    if NORMALIZE_BEFORE_DROPPING:
        top_1_max, top_2_max = _normalize_router_probabilities(
            router_probs, top_1_mask, top_2_mask)

    if padding_mask is not None:
        non_padding = (~padding_mask.reshape(-1).astype(bool)).astype(jnp.float32)
        top_1_mask = top_1_mask * non_padding[:, None]
        top_2_mask = top_2_mask * non_padding[:, None]

    expert_capacity = math.ceil(MOE_EVAL_CAPACITY_TOKEN_FRACTION * nb_tokens)

    # Top-1 capacity check is statically dead when capacity >= nb_tokens
    # (locations1 <= nb_tokens - 1 < capacity), so skip the cumsum there.
    if expert_capacity < nb_tokens:
        locations1 = jnp.cumsum(top_1_mask, axis=0) - 1
        top_1_mask = top_1_mask * (locations1 < expert_capacity).astype(jnp.float32)
    # Top-2 locations are offset by the per-expert top-1 count and CAN exceed
    # capacity even at fraction 1.0, so this check must stay.
    locations2 = jnp.cumsum(top_2_mask, axis=0) - 1
    locations2 = locations2 + jnp.sum(top_1_mask, axis=0, keepdims=True)
    top_2_mask = top_2_mask * (locations2 < expert_capacity).astype(jnp.float32)

    if not NORMALIZE_BEFORE_DROPPING:
        top_1_max, top_2_max = _normalize_router_probabilities(
            router_probs, top_1_mask, top_2_mask)

    gates1 = top_1_max[:, None] * top_1_mask
    gates2 = top_2_max[:, None] * top_2_mask
    return top_1_mask, gates1 + gates2


# ===================== parameter packing (done ONCE, off the hot path) ========

def pack_moe_params(params, lane=LANE):
    """Restack/pad/cast the expert weights for the fused kernel.  Constants per
    model, so compute once at load time rather than every forward."""
    E, H, F = params["w1"].shape
    EF = E * F
    Hp = _round_up(H, lane)
    pad_h = Hp - H

    w1c = jnp.transpose(params["w1"], (1, 0, 2)).reshape(H, EF)        # (H, E*F)
    w1c = jnp.pad(w1c, ((0, pad_h), (0, 0))).astype(jnp.bfloat16)      # (Hp, E*F) bf16
    b1c = params["b1"].reshape(1, EF).astype(jnp.float32)              # (1, E*F)
    w2c = params["w2"].reshape(EF, H)                                  # (E*F, H)
    w2c = jnp.pad(w2c, ((0, 0), (0, pad_h))).astype(jnp.bfloat16)      # (E*F, Hp) bf16
    b2m = jnp.pad(params["b2"].reshape(E, H), ((0, 0), (0, pad_h)))    # (E, Hp) f32

    # selector row e has ones in columns [e*F, (e+1)*F): gates @ sel == gate_rep.
    sel = jnp.repeat(jnp.eye(E, dtype=jnp.float32), F, axis=1)         # (E, E*F)
    selb2 = jnp.concatenate([sel, b2m], axis=1)                        # (E, E*F + Hp)
    GP = _round_up(E, lane)
    selb2 = jnp.pad(selb2, ((0, GP - E), (0, 0)))                      # (GP, E*F + Hp)

    return {
        "router_w": params["router_w"].astype(jnp.float32),
        "w1c": w1c, "b1c": b1c, "w2c": w2c, "selb2": selb2,
        "E": E, "F": F, "H": H, "Hp": Hp, "EF": EF, "GP": GP,
    }


# ============================ module forward ============================

def sync_nllb_moe_sparse_mlp(hidden_states, packed, padding_mask=None):
    B, S, H = hidden_states.shape
    E, Hp, GP = packed["E"], packed["Hp"], packed["GP"]
    T = B * S

    x_flat = hidden_states.reshape(T, H).astype(jnp.float32)

    # --- router: tiny matmul + softmax + top-2 glue, all in XLA (no kernel) ---
    logits = jnp.dot(x_flat, packed["router_w"],
                     preferred_element_type=jnp.float32)
    probs = jax.nn.softmax(logits, axis=-1)
    top_1_mask, router_probs = route_tokens(logits, probs, E, padding_mask)

    # --- lane padding of the per-forward tensors only (weights pre-packed) ---
    x_pad = jnp.pad(x_flat, ((0, 0), (0, Hp - H)))
    gates_pad = jnp.pad(router_probs.astype(jnp.float32), ((0, 0), (0, GP - E)))

    out_pad = fused_moe(x_pad, gates_pad, packed["w1c"], packed["b1c"],
                        packed["selb2"], packed["w2c"])
    out_flat = out_pad[:, :H]

    hidden_out = out_flat.reshape(B, S, H).astype(hidden_states.dtype)
    top_1_expert_index = jnp.argmax(top_1_mask, axis=-1).astype(jnp.int32)
    # TODO(synk): PyTorch moves (router_probs, top_1_expert_index) to 'cuda:0';
    # device placement has no Pallas equivalent and is omitted.
    # TODO(synk): expert_executor.dispatch_local's async expert prefetch (Archer)
    # has no equivalent here; all expert weights are resident.
    return hidden_out, (router_probs, top_1_expert_index)


# ============================ pure-JAX reference ============================

def _reference_forward(hidden_states, params, padding_mask=None):
    B, S, H = hidden_states.shape
    E = params["w1"].shape[0]
    T = B * S
    x_flat = hidden_states.reshape(T, H).astype(jnp.float32)
    logits = x_flat @ params["router_w"]
    probs = jax.nn.softmax(logits, axis=-1)
    top_1_mask, router_probs = route_tokens(logits, probs, E, padding_mask)
    next_states = jnp.zeros_like(x_flat)
    for e in range(E):
        h = jnp.maximum(x_flat @ params["w1"][e] + params["b1"][e], 0.0)
        y = (h @ params["w2"][e] + params["b2"][e]) * (1.0 - MOE_TOKEN_DROPOUT)
        next_states = next_states + y * router_probs[:, e:e + 1]
    next_states = jnp.where(next_states == 0.0, x_flat, next_states)
    return next_states.reshape(B, S, H)


# =================================== main ===================================

if __name__ == "__main__":
    key = jax.random.PRNGKey(0)
    kx, kr, k1, k2, k3, k4 = jax.random.split(key, 6)

    hidden_states = jax.random.normal(kx, (BATCH, SEQ, D_MODEL), jnp.float32)
    params = {
        "router_w": 0.02 * jax.random.normal(kr, (D_MODEL, NUM_EXPERTS), jnp.float32),
        "w1": jax.random.normal(k1, (NUM_EXPERTS, D_MODEL, FFN_DIM), jnp.float32)
              / math.sqrt(D_MODEL),
        "b1": 0.01 * jax.random.normal(k2, (NUM_EXPERTS, 1, FFN_DIM), jnp.float32),
        "w2": jax.random.normal(k3, (NUM_EXPERTS, FFN_DIM, D_MODEL), jnp.float32)
              / math.sqrt(FFN_DIM),
        "b2": 0.01 * jax.random.normal(k4, (NUM_EXPERTS, 1, D_MODEL), jnp.float32),
    }

    packed = pack_moe_params(params)   # once, off the per-forward path

    out, (router_probs, top1_idx) = sync_nllb_moe_sparse_mlp(
        hidden_states, packed, padding_mask=None)
    out = jax.block_until_ready(out)
    jax.block_until_ready(router_probs)
    jax.block_until_ready(top1_idx)

    ref = _reference_forward(hidden_states, params, padding_mask=None)
    max_diff = float(jnp.max(jnp.abs(out - ref)))
    assert out.shape == (BATCH, SEQ, D_MODEL)
    assert router_probs.shape == (BATCH * SEQ, NUM_EXPERTS)
    assert top1_idx.shape == (BATCH * SEQ,)
    # bf16 MXU operands vs f32 reference: tolerance loosened from 1e-3 to 2e-2.
    assert max_diff < 2e-2, f"mismatch vs reference: {max_diff}"
    print("KERNEL_OK")
</pallas_src>

<mosaic_0001>
module attributes {stable_mosaic.version = 11 : i64} {
  func.func @_fused_moe_kernel(%arg0: i32, %arg1: memref<8x128xf32, #tpu.memory_space<vmem>>, %arg2: memref<8x128xf32, #tpu.memory_space<vmem>>, %arg3: memref<128x512xbf16, #tpu.memory_space<vmem>>, %arg4: memref<1x512xf32, #tpu.memory_space<vmem>>, %arg5: memref<128x640xf32, #tpu.memory_space<vmem>>, %arg6: memref<512x128xbf16, #tpu.memory_space<vmem>>, %arg7: memref<8x128xf32, #tpu.memory_space<vmem>>) attributes {dimension_semantics = [#tpu.dimension_semantics<parallel>], iteration_bounds = array<i64: 2>, scalar_prefetch = 0 : i64, scratch_operands = 0 : i64, tpu.core_type = #tpu.core_type<tc>, window_params = [{transform_indices = @transform_0, window_bounds = array<i64: 8, 128>}, {transform_indices = @transform_1, window_bounds = array<i64: 8, 128>}, {pipeline_mode = #tpu.pipeline_mode<synchronous>, transform_indices = @transform_2, window_bounds = array<i64: 128, 512>}, {pipeline_mode = #tpu.pipeline_mode<synchronous>, transform_indices = @transform_3, window_bounds = array<i64: 1, 512>}, {pipeline_mode = #tpu.pipeline_mode<synchronous>, transform_indices = @transform_4, window_bounds = array<i64: 128, 640>}, {pipeline_mode = #tpu.pipeline_mode<synchronous>, transform_indices = @transform_5, window_bounds = array<i64: 512, 128>}, {transform_indices = @transform_6, window_bounds = array<i64: 8, 128>}]} {
    %c0 = arith.constant 0 : index
    %c0_0 = arith.constant 0 : index
    %0 = vector.load %arg1[%c0, %c0_0] : memref<8x128xf32, #tpu.memory_space<vmem>>, vector<8x128xf32>
    %1 = arith.truncf %0 : vector<8x128xf32> to vector<8x128xbf16>
    %c0_1 = arith.constant 0 : index
    %c0_2 = arith.constant 0 : index
    %2 = vector.load %arg3[%c0_1, %c0_2] : memref<128x512xbf16, #tpu.memory_space<vmem>>, vector<128x512xbf16>
    %cst = arith.constant dense<0.000000e+00> : vector<8x512xf32>
    %3 = tpu.matmul %1, %2, %cst {dimension_numbers = #tpu.dot_dimension_numbers<[1], [0], [0], [1], [0, 0, 1, 1], [], []>} : vector<8x128xbf16>, vector<128x512xbf16>, vector<8x512xf32> -> vector<8x512xf32>
    %c0_3 = arith.constant 0 : index
    %c0_4 = arith.constant 0 : index
    %4 = vector.load %arg4[%c0_3, %c0_4] : memref<1x512xf32, #tpu.memory_space<vmem>>, vector<1x512xf32>
    %5 = vector.broadcast %4 : vector<1x512xf32> to vector<8x512xf32>
    %6 = arith.addf %3, %5 : vector<8x512xf32>
    %cst_5 = arith.constant 0.000000e+00 : f32
    %7 = vector.broadcast %cst_5 : f32 to vector<8x512xf32>
    %8 = arith.maximumf %6, %7 : vector<8x512xf32>
    %c0_6 = arith.constant 0 : index
    %c0_7 = arith.constant 0 : index
    %9 = vector.load %arg2[%c0_6, %c0_7] : memref<8x128xf32, #tpu.memory_space<vmem>>, vector<8x128xf32>
    %c0_8 = arith.constant 0 : index
    %c0_9 = arith.constant 0 : index
    %10 = vector.load %arg5[%c0_8, %c0_9] : memref<128x640xf32, #tpu.memory_space<vmem>>, vector<128x640xf32>
    %cst_10 = arith.constant dense<0.000000e+00> : vector<8x640xf32>
    %11 = tpu.matmul %9, %10, %cst_10 {dimension_numbers = #tpu.dot_dimension_numbers<[1], [0], [0], [1], [0, 0, 1, 1], [], []>} : vector<8x128xf32>, vector<128x640xf32>, vector<8x640xf32> -> vector<8x640xf32>
    %12 = vector.extract_strided_slice %11 {offsets = [0, 0], sizes = [8, 512], strides = [1, 1]} : vector<8x640xf32> to vector<8x512xf32>
    %13 = vector.extract_strided_slice %11 {offsets = [0, 512], sizes = [8, 128], strides = [1, 1]} : vector<8x640xf32> to vector<8x128xf32>
    %14 = arith.mulf %8, %12 : vector<8x512xf32>
    %15 = arith.truncf %14 : vector<8x512xf32> to vector<8x512xbf16>
    %c0_11 = arith.constant 0 : index
    %c0_12 = arith.constant 0 : index
    %16 = vector.load %arg6[%c0_11, %c0_12] : memref<512x128xbf16, #tpu.memory_space<vmem>>, vector<512x128xbf16>
    %cst_13 = arith.constant dense<0.000000e+00> : vector<8x128xf32>
    %17 = tpu.matmul %15, %16, %cst_13 {dimension_numbers = #tpu.dot_dimension_numbers<[1], [0], [0], [1], [0, 0, 1, 1], [], []>} : vector<8x512xbf16>, vector<512x128xbf16>, vector<8x128xf32> -> vector<8x128xf32>
    %18 = arith.addf %17, %13 : vector<8x128xf32>
    %cst_14 = arith.constant 0.000000e+00 : f32
    %19 = vector.broadcast %cst_14 : f32 to vector<8x128xf32>
    %20 = arith.cmpf oeq, %18, %19 : vector<8x128xf32>
    %21 = arith.select %20, %0, %18 : vector<8x128xi1>, vector<8x128xf32>
    %c0_15 = arith.constant 0 : index
    %c0_16 = arith.constant 0 : index
    %22 = vector.load %arg7[%c0_15, %c0_16] : memref<8x128xf32, #tpu.memory_space<vmem>>, vector<8x128xf32>
    tpu.vector_store %arg7[%c0_15, %c0_16], %21 {strides = array<i32>} : memref<8x128xf32, #tpu.memory_space<vmem>>, vector<8x128xf32>,
    return
  }
  func.func @transform_0(%arg0: i32) -> (i32, i32) {
    %c0_i32 = arith.constant 0 : i32
    %c0_i32_0 = arith.constant 0 : i32
    return %arg0, %c0_i32 : i32, i32
  }
  func.func @transform_1(%arg0: i32) -> (i32, i32) {
    %c0_i32 = arith.constant 0 : i32
    %c0_i32_0 = arith.constant 0 : i32
    return %arg0, %c0_i32 : i32, i32
  }
  func.func @transform_2(%arg0: i32) -> (i32, i32) {
    %c0_i32 = arith.constant 0 : i32
    %c0_i32_0 = arith.constant 0 : i32
    %c0_i32_1 = arith.constant 0 : i32
    return %c0_i32, %c0_i32_0 : i32, i32
  }
  func.func @transform_3(%arg0: i32) -> (i32, i32) {
    %c0_i32 = arith.constant 0 : i32
    %c0_i32_0 = arith.constant 0 : i32
    %c0_i32_1 = arith.constant 0 : i32
    return %c0_i32, %c0_i32_0 : i32, i32
  }
  func.func @transform_4(%arg0: i32) -> (i32, i32) {
    %c0_i32 = arith.constant 0 : i32
    %c0_i32_0 = arith.constant 0 : i32
    %c0_i32_1 = arith.constant 0 : i32
    return %c0_i32, %c0_i32_0 : i32, i32
  }
  func.func @transform_5(%arg0: i32) -> (i32, i32) {
    %c0_i32 = arith.constant 0 : i32
    %c0_i32_0 = arith.constant 0 : i32
    %c0_i32_1 = arith.constant 0 : i32
    return %c0_i32, %c0_i32_0 : i32, i32
  }
  func.func @transform_6(%arg0: i32) -> (i32, i32) {
    %c0_i32 = arith.constant 0 : i32
    %c0_i32_0 = arith.constant 0 : i32
    return %arg0, %c0_i32 : i32, i32
  }
}

</mosaic_0001>

<bundles_post_ra>
// kernel: tpu_custom_call.1
= control target key start
LH: loop header
LB: loop body
LE: loop exit
PB: predicated region body
PF: predicated region fallthrough
CT: control target
= control target key end

     0   :  { %s2241_s0 = inlined_call_operand.hbm [shape: f32[16,128], index: 0, kind: input, shape index: {}]   ;;  %s2242_s1 = inlined_call_operand.hbm [shape: f32[16,128], index: 1, kind: input, shape index: {}]   ;;  %s2243_s2 = inlined_call_operand.hbm [shape: bf16[128,512], index: 2, kind: input, shape index: {}]   ;;  %s2244_s3 = inlined_call_operand.hbm [shape: f32[1,512], index: 3, kind: input, shape index: {}]   ;;  %s2245_s4 = inlined_call_operand.hbm [shape: f32[128,640], index: 4, kind: input, shape index: {}]   ;;  %s2246_s5 = inlined_call_operand.hbm [shape: bf16[512,128], index: 5, kind: input, shape index: {}]   ;;  %s2247_s6 = inlined_call_operand.hbm [shape: f32[16,128], index: 6, kind: output, shape index: {}]  }
   0x1   :  { %2248 = sst [smem:[#allocation21_spill]] %s2243_s2 }
   0x2   :  { %2249 = sst [smem:[#allocation22_spill]] %s2244_s3 }
   0x3   :  { %2250 = sst [smem:[#allocation23_spill]] %s2245_s4 }
   0x4   :  { %2251 = sst [smem:[#allocation24_spill]] %s2246_s5 }
   0x5   :  { %11 = vsyncpa [#allocation3], 0 }
   0x6   :  { %13 = vsyncpa [#allocation3 + $0x1], 0 }
   0x7   :  { %14 = vsyncpa [#allocation6], 0 }
   0x8   :  { %16 = vsyncpa [#allocation6 + $0x1], 0 }
   0x9   :  { %17 = vsyncpa [#allocation9], 0 }
   0xa   :  { %18 = vsyncpa [#allocation12], 0 }
   0xb   :  { %19 = vsyncpa [#allocation4], 0 }
   0xc   :  { %21 = vsyncpa [#allocation4 + $0x1], 0  ;;  %s2029_s21 = smov 0   ;;  %s2031_s22 = smov 0  }
   0xd   :  { %s2033_s23 = smov 0   ;;  %s2035_s24 = smov 0  }
   0xe LB: > { %s2252_s2 = sld [smem:[#allocation21_spill]]  ;;  %s2053_s28 = sadd.s32 4294967295, %s1982_s24   ;;  %s1982_s24 = sphi %s2035_s24, %s2269_s24   ;;  %s1978_s23 = sphi %s2033_s23, %s2268_s23   ;;  %s1974_s22 = sphi %s2031_s22, %s2267_s22   ;;  %s1970_s21 = sphi %s2029_s21, %s2266_s21  }
   0xf   : > { %p1280_p0 = scmp.ge.s32.totalorder %s1982_s24, 1  ;;  %p48_p1 = scmp.eq.s32.totalorder %s2053_s28, 0 }
  0x10   : > { %p194_p2 = scmp.lt.s32.totalorder %s1982_s24, 3  ;;  %s1984_s30 = smov [#allocation7]  }
  0x11   : > { %s207_s7 = sshll.u32 %s1984_s30, 4  ;;  %s2254_s3 = sld [smem:[#allocation22_spill]]  ;;  %s208_s7 = int_to_ptr.vmem [resolvable:$true] %s207_s7 }
  0x12   : > { %p2058_p3 = pnand %p1280_p0, %p194_p2  ;;  %s2256_s4 = sld [smem:[#allocation23_spill]] }
  0x13   : > { %s1985_s15 = smov [#allocation8]   ;;  %s1986_s17 = smov 256  }
  0x14   : > { %s205_s27 = sshll.u32 %s2252_s2, 4  ;;  %p1644_p4 = pneg %p2058_p3  ;;  %s206_s27 = int_to_ptr.hbm [resolvable:$true] %s205_s27 }
  0x15   : > { %s222_s16 = sshll.u32 %s1985_s15, 4  ;;  %s1987_s18 = smov 16   ;;  %s223_s16 = int_to_ptr.vmem [resolvable:$true] %s222_s16 }
  0x16   : > { %p2070_p6 = pnand %p1644_p4, %p48_p1  ;;  %s1988_s19 = smov [#allocation10]  }
  0x17   : > { %s220_s10 = sshll.u32 %s2254_s3, 4  ;;  %s233_s20 = sshll.u32 %s1988_s19, 4  ;;  %s221_s10 = int_to_ptr.hbm [resolvable:$true] %s220_s10  ;;  %s234_s20 = int_to_ptr.vmem [resolvable:$true] %s233_s20 }
  0x18   : > { %s231_s14 = sshll.u32 %s2256_s4, 4  ;;  %s2257_s5 = sld [smem:[#allocation24_spill]]  ;;  %s232_s14 = int_to_ptr.hbm [resolvable:$true] %s231_s14 }
  0x19   : > { %1647 = dma.hbm_to_vmem [thread:$0]  (!%p2070_p6), %s206_s27, 4096, %s208_s7, [#allocation6], %s1986_s17, %s1986_s17, %s1987_s18  }
  0x1a   : > { %1650 = dma.hbm_to_vmem [thread:$0]  (!%p2070_p6), %s221_s10, 64, %s223_s16, [#allocation9]  }
  0x1b   : > { %s1989_s8 = smov 640   ;;  %s1990_s27 = smov 40  }
  0x1c   : > { %1653 = dma.hbm_to_vmem [thread:$0]  (!%p2070_p6), %s232_s14, 10240, %s234_s20, [#allocation9], %s1989_s8, %s1989_s8, %s1990_s27  }
  0x1d   : > { %s1991_s7 = smov [#allocation11]   ;;  %s1992_s10 = smov 64  }
  0x1e   : > { %s245_s30 = sshll.u32 %s2257_s5, 4  ;;  %s247_s9 = sshll.u32 %s1991_s7, 4  ;;  %s246_s30 = int_to_ptr.hbm [resolvable:$true] %s245_s30  ;;  %s248_s9 = int_to_ptr.vmem [resolvable:$true] %s247_s9 }
  0x1f   : > { %s1993_s12 = smov 4   ;;  %s1279_s13 = sadd.s32 4294967294, %s1982_s24  }
  0x20   : > { %1656 = dma.hbm_to_vmem [thread:$0]  (!%p2070_p6), %s246_s30, 4096, %s248_s9, [#allocation12], %s1992_s10, %s1992_s10, %s1993_s12  }
  0x21   : > { %s2090_s15 = sadd.s32 1, %s1982_s24   ;;  %s34_s14 = sadd.s32 1, %s1978_s23 }
  0x22   : > { %s31_s16 = ssub.s32 %s1982_s24, %s2090_s15  ;;  %p41_p8 = scmp.ne.s32.totalorder %s1978_s23, %s1974_s22 }
  0x23   : > { %p32_p7 = scmp.eq.s32.totalorder %s31_s16, 0  ;;  %p42_p9 = scmp.eq.s32.totalorder %s1982_s24, 0 }
  0x24   : > { %p47_p10 = scmp.ne.s32.totalorder %s1974_s22, %s1970_s21  ;;  %p181_p13 = scmp.eq.s32.totalorder %s2053_s28, 1 }
  0x25   : > { %s2101_s17 = scalar_select %p32_p7, %s1978_s23, %s34_s14  }
  0x26   : > { %p2103_p11 = por %p42_p9, %p41_p8  ;;  %p2109_p12 = por %p48_p1, %p47_p10 }
  0x27   : > { %2258 = sst [smem:[#allocation20_spill]] %s2101_s17  ;;  %p187_p0 = scmp.eq.s32.totalorder %s1279_s13, 1 }
  0x28   : > { %p1672_p2 = scmp.lt.s32.totalorder %s1982_s24, 2  ;;  %s261_s19 = sand.u32 1, %s1978_s23  }
  0x29   : > { %p2116_p4 = por %p181_p13, %p41_p8  ;;  %p2120_p6 = por %p187_p0, %p47_p10 }
  0x2a   : > { %s2124_s26 = sshll.u32 %s261_s19, 3  ;;  %s1287_s30 = sshll.u32 %s1982_s24, 3 }
  0x2b   : > { %s269_s7 = scalar_lea.hbm %s2241_s0, %s1287_s30  ;;  %s265_s9 = scalar_lea.vmem [#allocation2], %s2124_s26 }
  0x2c   : > { %s273_s10 = sshll.u32 %s265_s9, 4  ;;  %s271_s12 = sshll.u32 %s269_s7, 4  ;;  %s274_s10 = int_to_ptr.vmem [resolvable:$true] %s273_s10  ;;  %s272_s12 = int_to_ptr.hbm [resolvable:$true] %s271_s12 }
  0x2d   : > { %p2133_p7 = pnand %p1672_p2, %p2103_p11  ;;  %s288_s2 = scalar_lea.hbm %s2242_s1, %s1287_s30 }
  0x2e   : > { %s280_s3 = sand.u32 1, %s1982_s24   ;;  %s262_s4 = scalar_lea.sflag [#allocation3], %s261_s19 }
  0x2f   : > { %s1840_s8 = sshra.s32 %s272_s12, 4  ;;  %p1844_p9 = pneg %p2133_p7  ;;  %s1841_s8 = int_to_ptr.hbm [resolvable:$true] %s1840_s8 }
  0x30   : > { %s1842_s27 = scalar_lea.hbm %s1841_s8, 8  ;;  %s1847_s9 = scalar_lea.hbm %s2241_s0, 16 }
  0x31   : > { %p1843_p8 = scmp.ne.s32.totalorder %s1841_s8, %s1842_s27  ;;  %p1848_p13 = scmp.lt.s32.totalorder %s1841_s8, %s2241_s0 }
  0x32   : > { %p1849_p0 = scmp.lt.s32.totalorder %s1847_s9, %s1842_s27 }
  0x33   : > { %p1845_p10 = pnand %p1844_p9, %p1843_p8 }
  0x34   : > { %p1850_p2 = por %p1849_p0, %p1848_p13 }
  0x35   : > { %p1846_p11 = pneg %p1845_p10 }
  0x37   : > { %p1851_p5 = pnand %p1850_p2, %p1846_p11 }
  0x39   : > { %1854 = shalt.err (!%p1851_p5)
}
  0x3a   : > { %1660 = dma.hbm_to_vmem [thread:$0]  (!%p2133_p7), %s272_s12, 128, %s274_s10, %s262_s4  }
  0x3b   : > { %s290_s19 = sshll.u32 %s288_s2, 4  ;;  %s284_s30 = scalar_lea.vmem [#allocation5], %s2124_s26  ;;  %s291_s19 = int_to_ptr.hbm [resolvable:$true] %s290_s19 }
  0x3c   : > { %s292_s5 = sshll.u32 %s284_s30, 4  ;;  %s281_s18 = scalar_lea.sflag [#allocation6], %s280_s3  ;;  %s293_s5 = int_to_ptr.vmem [resolvable:$true] %s292_s5 }
  0x3d   : > { %s1870_s7 = sshra.s32 %s291_s19, 4  ;;  %s1877_s9 = scalar_lea.hbm %s2242_s1, 16  ;;  %s1871_s7 = int_to_ptr.hbm [resolvable:$true] %s1870_s7 }
  0x3e   : > { %s1872_s17 = scalar_lea.hbm %s1871_s7, 8  ;;  %p1878_p5 = scmp.lt.s32.totalorder %s1871_s7, %s2242_s1 }
  0x3f   : > { %p1873_p8 = scmp.ne.s32.totalorder %s1871_s7, %s1872_s17  ;;  %p1879_p13 = scmp.lt.s32.totalorder %s1877_s9, %s1872_s17 }
  0x41   : > { %p1875_p10 = pnand %p1873_p8, %p1844_p9  ;;  %p1880_p0 = por %p1879_p13, %p1878_p5 }
  0x43   : > { %p1876_p11 = pneg %p1875_p10 }
  0x45   : > { %p1881_p2 = pnand %p1880_p0, %p1876_p11 }
  0x47   : > { %1884 = shalt.err (!%p1881_p2)
}
  0x48   : > { %1663 = dma.hbm_to_vmem [thread:$0]  (!%p2133_p7), %s291_s19, 128, %s293_s5, %s281_s18  }
  0x49   : > { %301 = sbr.rel (%p2058_p3) target bundleno = 435 (0x1b3), region = 44  ;;  %s2169_s2 = sand.u32 (!%p2058_p3), 1, %s1974_s22  }
  0x4a   : > { %s2172_s3 = sshll.u32 (!%p2058_p3), %s2169_s2, 3  ;;  %s304_s26 = scalar_lea.sflag (!%p2058_p3), [#allocation3], %s2169_s2 }
  0x4b   : > { %s307_s17 = scalar_lea.vmem (!%p2058_p3), [#allocation2], %s2172_s3 }
  0x4e   : > { %1945 = dma.done.wait (%p2109_p12), %s304_s26, 128  }
  0x4f   : > { %1947 = vsyncadd (%p2109_p12), %s304_s26, 4294967168  ;;  %s313_s5 = sand.u32 1, %s2053_s28   ;;  %s317_s10 = scalar_lea.vmem [#allocation5], %s2172_s3 }
  0x50   : > { %s314_s29 = scalar_lea.sflag [#allocation6], %s313_s5 }
  0x51   : > { %1949 = dma.done.wait (%p2109_p12), %s314_s29, 128  }
  0x52   : > { %1951 = vsyncadd (%p2109_p12), %s314_s29, 4294967168 }
  0x53   : > { %1953 = dma.done.wait (%p48_p1), [#allocation6], 4096  }
  0x54   : > { %1955 = vsyncadd (%p48_p1), [#allocation6], 4294963200 }
  0x55   : > { %1957 = dma.done.wait (%p48_p1), [#allocation9], 10304  }
  0x56   : > { %1959 = vsyncadd (%p48_p1), [#allocation9], 4294956992 }
  0x57   : > { %1961 = dma.done.wait (%p48_p1), [#allocation12], 4096  }
  0x58   : > { %1963 = vsyncadd (%p48_p1), [#allocation12], 4294963200  ;;  %v1412_v0 = vld [vmem:[#allocation7 + $0xe0] sm:$0xf]  ;;  %v1588_v1 = vld [vmem:[#allocation7 + $0xec] sm:$0xf0] }
  0x59   : > { %v1586_v2 = vld [vmem:[#allocation7 + $0xe4] sm:$0xf]  ;;  %v1413_v3 = vor.u32 %v1588_v1, %v1412_v0  ;;  %v1414_v4 = vld [vmem:[#allocation7 + $0xf0] sm:$0xf0]  ;;  %v1420_v5 = vld [vmem:[#allocation7 + $0xe8] sm:$0xf] }
  0x5a   : > { %v1589_v6 = vld [vmem:[#allocation7 + $0xf4] sm:$0xf0]  ;;  %v1417_v7 = vor.u32 %v1586_v2, %v1414_v4  ;;  %v1587_v9 = vld [vmem:[#allocation7 + $0xec] sm:$0xf]  ;;  %v1422_v10 = vld [vmem:[#allocation7 + $0xf8] sm:$0xf0] }
  0x5b   : > { %v1421_v8 = vor.u32 %v1589_v6, %v1420_v5  ;;  %v1396_v11 = vld [vmem:[#allocation7 + $0xc0] sm:$0xf]  ;;  %576 = vmatpush.bf16.msra.mxu0 %v1413_v3  ;;  %v1425_v12 = vor.u32 %v1587_v9, %v1422_v10  ;;  %v1584_v13 = vld [vmem:[#allocation7 + $0xcc] sm:$0xf0]  ;;  %v1582_v14 = vld [vmem:[#allocation7 + $0xc4] sm:$0xf] }
  0x5c   : > { %v1398_v15 = vld [vmem:[#allocation7 + $0xd0] sm:$0xf0]  ;;  %589 = vmatpush.bf16.msra.mxu1 %v1417_v7  ;;  %v1397_v16 = vor.u32 %v1584_v13, %v1396_v11  ;;  %v1404_v18 = vld [vmem:[#allocation7 + $0xc8] sm:$0xf]  ;;  %v1585_v19 = vld [vmem:[#allocation7 + $0xd4] sm:$0xf0] }
  0x5d   : > { %602 = vmatpush.bf16.msra.mxu2 %v1421_v8  ;;  %v1401_v17 = vor.u32 %v1582_v14, %v1398_v15  ;;  %v1583_v20 = vld [vmem:[#allocation7 + $0xcc] sm:$0xf]  ;;  %615 = vmatpush.bf16.msra.mxu3 %v1425_v12  ;;  %v1405_v21 = vor.u32 %v1585_v19, %v1404_v18  ;;  %v1406_v22 = vld [vmem:[#allocation7 + $0xd8] sm:$0xf0]  ;;  %v1380_v23 = vld [vmem:[#allocation7 + $0xa0] sm:$0xf] }
  0x5e   : > { %v1580_v24 = vld [vmem:[#allocation7 + $0xac] sm:$0xf0]  ;;  %v1409_v25 = vor.u32 %v1583_v20, %v1406_v22  ;;  %v1578_v26 = vld [vmem:[#allocation7 + $0xa4] sm:$0xf]  ;;  %v1382_v27 = vld [vmem:[#allocation7 + $0xb0] sm:$0xf0] }
  0x5f   : > { %v1388_v28 = vld [vmem:[#allocation7 + $0xa8] sm:$0xf]  ;;  %577 = vmatpush.bf16.msra.mxu0 %v1397_v16  ;;  %v1381_v29 = vor.u32 %v1580_v24, %v1380_v23  ;;  %v1581_v30 = vld [vmem:[#allocation7 + $0xb4] sm:$0xf0]  ;;  %v1579_v31 = vld [vmem:[#allocation7 + $0xac] sm:$0xf]  ;;  %v1385_v33 = vor.u32 %v1578_v26, %v1382_v27 }
  0x60   : > { %v1390_v32 = vld [vmem:[#allocation7 + $0xb8] sm:$0xf0]  ;;  %590 = vmatpush.bf16.msra.mxu1 %v1401_v17  ;;  %v1389_v34 = vor.u32 %v1581_v30, %v1388_v28  ;;  %v1364_v35 = vld [vmem:[#allocation7 + $0x80] sm:$0xf]  ;;  %v1576_v36 = vld [vmem:[#allocation7 + $0x8c] sm:$0xf0] }
  0x61   : > { %603 = vmatpush.bf16.msra.mxu2 %v1405_v21  ;;  %v1574_v37 = vld [vmem:[#allocation7 + $0x84] sm:$0xf]  ;;  %616 = vmatpush.bf16.msra.mxu3 %v1409_v25  ;;  %v1393_v38 = vor.u32 %v1579_v31, %v1390_v32  ;;  %v1366_v39 = vld [vmem:[#allocation7 + $0x90] sm:$0xf0]  ;;  %v1372_v40 = vld [vmem:[#allocation7 + $0x88] sm:$0xf]  ;;  %v1365_v44 = vor.u32 %v1576_v36, %v1364_v35 }
  0x62   : > { %v1577_v41 = vld [vmem:[#allocation7 + $0x94] sm:$0xf0]  ;;  %v1575_v42 = vld [vmem:[#allocation7 + $0x8c] sm:$0xf]  ;;  %v1374_v43 = vld [vmem:[#allocation7 + $0x98] sm:$0xf0]  ;;  %v1369_v45 = vor.u32 %v1574_v37, %v1366_v39 }
  0x63   : > { %578 = vmatpush.bf16.msra.mxu0 %v1381_v29  ;;  %v1373_v46 = vor.u32 %v1577_v41, %v1372_v40  ;;  %v1348_v47 = vld [vmem:[#allocation7 + $0x60] sm:$0xf]  ;;  %v1572_v48 = vld [vmem:[#allocation7 + $0x6c] sm:$0xf0]  ;;  %v1570_v49 = vld [vmem:[#allocation7 + $0x64] sm:$0xf]  ;;  %v1377_v50 = vor.u32 %v1575_v42, %v1374_v43 }
  0x64   : > { %591 = vmatpush.bf16.msra.mxu1 %v1385_v33  ;;  %v1350_v51 = vld [vmem:[#allocation7 + $0x70] sm:$0xf0]  ;;  %v1356_v52 = vld [vmem:[#allocation7 + $0x68] sm:$0xf]  ;;  %v1573_v53 = vld [vmem:[#allocation7 + $0x74] sm:$0xf0]  ;;  %v1349_v56 = vor.u32 %v1572_v48, %v1348_v47 }
  0x65   : > { %604 = vmatpush.bf16.msra.mxu2 %v1389_v34  ;;  %617 = vmatpush.bf16.msra.mxu3 %v1393_v38  ;;  %v1571_v54 = vld [vmem:[#allocation7 + $0x6c] sm:$0xf]  ;;  %v1358_v55 = vld [vmem:[#allocation7 + $0x78] sm:$0xf0]  ;;  %v1353_v57 = vor.u32 %v1570_v49, %v1350_v51  ;;  %v1357_v58 = vor.u32 %v1573_v53, %v1356_v52  ;;  %v1332_v59 = vld [vmem:[#allocation7 + $0x40] sm:$0xf] }
  0x66   : > { %v1568_v60 = vld [vmem:[#allocation7 + $0x4c] sm:$0xf0]  ;;  %v1566_v61 = vld [vmem:[#allocation7 + $0x44] sm:$0xf]  ;;  %v1361_v62 = vor.u32 %v1571_v54, %v1358_v55  ;;  %v1334_v63 = vld [vmem:[#allocation7 + $0x50] sm:$0xf0] }
  0x67   : > { %579 = vmatpush.bf16.msra.mxu0 %v1365_v44  ;;  %v1340_v0 = vld [vmem:[#allocation7 + $0x48] sm:$0xf]  ;;  %v1569_v1 = vld [vmem:[#allocation7 + $0x54] sm:$0xf0]  ;;  %v1567_v2 = vld [vmem:[#allocation7 + $0x4c] sm:$0xf]  ;;  %v1333_v4 = vor.u32 %v1568_v60, %v1332_v59  ;;  %v1337_v5 = vor.u32 %v1566_v61, %v1334_v63 }
  0x68   : > { %592 = vmatpush.bf16.msra.mxu1 %v1369_v45  ;;  %v1342_v3 = vld [vmem:[#allocation7 + $0x58] sm:$0xf0]  ;;  %v1341_v6 = vor.u32 %v1569_v1, %v1340_v0  ;;  %v1316_v7 = vld [vmem:[#allocation7 + $0x20] sm:$0xf]  ;;  %v1564_v8 = vld [vmem:[#allocation7 + $0x2c] sm:$0xf0] }
  0x69   : > { %605 = vmatpush.bf16.msra.mxu2 %v1373_v46  ;;  %618 = vmatpush.bf16.msra.mxu3 %v1377_v50  ;;  %v1562_v9 = vld [vmem:[#allocation7 + $0x24] sm:$0xf]  ;;  %v1345_v10 = vor.u32 %v1567_v2, %v1342_v3  ;;  %v1318_v11 = vld [vmem:[#allocation7 + $0x30] sm:$0xf0]  ;;  %v1324_v12 = vld [vmem:[#allocation7 + $0x28] sm:$0xf]  ;;  %v1317_v16 = vor.u32 %v1564_v8, %v1316_v7 }
  0x6a   : > { %v1565_v13 = vld [vmem:[#allocation7 + $0x34] sm:$0xf0]  ;;  %v1563_v14 = vld [vmem:[#allocation7 + $0x2c] sm:$0xf]  ;;  %v1326_v15 = vld [vmem:[#allocation7 + $0x38] sm:$0xf0]  ;;  %v1321_v17 = vor.u32 %v1562_v9, %v1318_v11 }
  0x6b   : > { %580 = vmatpush.bf16.msra.mxu0 %v1349_v56  ;;  %v1325_v18 = vor.u32 %v1565_v13, %v1324_v12  ;;  %v1300_v19 = vld [vmem:[#allocation7] sm:$0xf]  ;;  %v1560_v20 = vld [vmem:[#allocation7 + $0xc] sm:$0xf0]  ;;  %v1558_v21 = vld [vmem:[#allocation7 + $0x4] sm:$0xf]  ;;  %v1329_v22 = vor.u32 %v1563_v14, %v1326_v15 }
  0x6c   : > { %593 = vmatpush.bf16.msra.mxu1 %v1353_v57  ;;  %v1302_v23 = vld [vmem:[#allocation7 + $0x10] sm:$0xf0]  ;;  %v1308_v24 = vld [vmem:[#allocation7 + $0x8] sm:$0xf]  ;;  %v1561_v25 = vld [vmem:[#allocation7 + $0x14] sm:$0xf0]  ;;  %v1301_v28 = vor.u32 %v1560_v20, %v1300_v19 }
  0x6d   : > { %606 = vmatpush.bf16.msra.mxu2 %v1357_v58  ;;  %619 = vmatpush.bf16.msra.mxu3 %v1361_v62  ;;  %v1559_v26 = vld [vmem:[#allocation7 + $0xc] sm:$0xf]  ;;  %v1310_v27 = vld [vmem:[#allocation7 + $0x18] sm:$0xf0]  ;;  %v1305_v29 = vor.u32 %v1558_v21, %v1302_v23  ;;  %v1309_v30 = vor.u32 %v1561_v25, %v1308_v24  ;;  %v709_v33 = vld [vmem:[#allocation10 + $0x260] sm:$0xff]  ;;  %s1555_s11 = sshll.u32 %s2053_s28, 3 }
  0x6e   : > { %v1313_v31 = vor.u32 %v1559_v26, %v1310_v27  ;;  %v708_v32 = vld [vmem:[#allocation10 + $0x258] sm:$0xff]  ;;  %v710_v34 = vld [vmem:[#allocation10 + $0x268] sm:$0xff]  ;;  %v711_v35 = vld [vmem:[#allocation10 + $0x270] sm:$0xff]  ;;  %s1143_s14 = scalar_lea.hbm %s2247_s6, %s1555_s11  ;;  %s371_s19 = scalar_lea.vmem [#allocation13], %s2172_s3 }
  0x6f   : > { %581 = vmatpush.bf16.msra.mxu0 %v1333_v4  ;;  %v703_v36 = vld [vmem:[#allocation10 + $0x230] sm:$0xff]  ;;  %v704_v37 = vld [vmem:[#allocation10 + $0x238] sm:$0xff]  ;;  %v705_v38 = vld [vmem:[#allocation10 + $0x240] sm:$0xff]  ;;  %s1145_s30 = sshll.u32 %s371_s19, 4  ;;  %s1147_s18 = sshll.u32 %s1143_s14, 4  ;;  %s1146_s30 = int_to_ptr.vmem [resolvable:$true] %s1145_s30  ;;  %s1148_s18 = int_to_ptr.hbm [resolvable:$true] %s1147_s18 }
  0x70   : > { %594 = vmatpush.bf16.msra.mxu1 %v1337_v5  ;;  %v706_v39 = vld [vmem:[#allocation10 + $0x248] sm:$0xff]  ;;  %v699_v42 = vld [vmem:[#allocation10 + $0x210] sm:$0xff]  ;;  %v700_v43 = vld [vmem:[#allocation10 + $0x218] sm:$0xff]  ;;  %s1133_s28 = scalar_lea.sflag [#allocation4], %s2169_s2  ;;  %s1914_s7 = sshra.s32 %s1148_s18, 4  ;;  %s1915_s7 = int_to_ptr.hbm [resolvable:$true] %s1914_s7 }
  0x71   : > { %607 = vmatpush.bf16.msra.mxu2 %v1341_v6  ;;  %620 = vmatpush.bf16.msra.mxu3 %v1345_v10  ;;  %v698_v40 = vld [vmem:[#allocation10 + $0x208] sm:$0xff]  ;;  %v701_v44 = vld [vmem:[#allocation10 + $0x220] sm:$0xff]  ;;  %v695_v47 = vld [vmem:[#allocation10 + $0x1f0] sm:$0xff]  ;;  %s1916_s8 = scalar_lea.hbm %s1915_s7, 8  ;;  %s1920_s16 = scalar_lea.hbm %s2247_s6, 16 }
  0x72   : > { %v2200_v41 = vld [vmem:[%s307_s17] sm:$0xff]  ;;  %v691_v53 = vld [vmem:[#allocation10 + $0x1d0] sm:$0xff]  ;;  %p1917_p1 = scmp.ne.s32.totalorder %s1915_s7, %s1916_s8  ;;  %p1921_p7 = scmp.lt.s32.totalorder %s1915_s7, %s2247_s6 }
  0x73   : > { %582 = vmatpush.bf16.msra.mxu0 %v1317_v16  ;;  %v693_v45 = vld [vmem:[#allocation10 + $0x1e0] sm:$0xff]  ;;  %v694_v46 = vld [vmem:[#allocation10 + $0x1e8] sm:$0xff]  ;;  %v373_v48 = vpack.c.bf16 %v2200_v41, %v2200_v41  ;;  %v696_v49 = vld [vmem:[#allocation10 + $0x1f8] sm:$0xff]  ;;  %p1922_p9 = scmp.lt.s32.totalorder %s1920_s16, %s1916_s8 }
  0x74   : > { %595 = vmatpush.bf16.msra.mxu1 %v1321_v17  ;;  %v688_v50 = vld [vmem:[#allocation10 + $0x1b8] sm:$0xff]  ;;  %v689_v51 = vld [vmem:[#allocation10 + $0x1c0] sm:$0xff]  ;;  %v690_v52 = vld [vmem:[#allocation10 + $0x1c8] sm:$0xff]  ;;  %p1918_p3 = pnand %p1917_p1, %p2116_p4 }
  0x75   : > { %608 = vmatpush.bf16.msra.mxu2 %v1325_v18  ;;  %621 = vmatpush.bf16.msra.mxu3 %v1329_v22  ;;  %v683_v54 = vld [vmem:[#allocation10 + $0x190] sm:$0xff]  ;;  %v684_v55 = vld [vmem:[#allocation10 + $0x198] sm:$0xff]  ;;  %v685_v56 = vld [vmem:[#allocation10 + $0x1a0] sm:$0xff]  ;;  %p1923_p8 = por %p1922_p9, %p1921_p7 }
  0x76   : > { %v686_v57 = vld [vmem:[#allocation10 + $0x1a8] sm:$0xff]  ;;  %v679_v59 = vld [vmem:[#allocation10 + $0x170] sm:$0xff]  ;;  %v680_v60 = vld [vmem:[#allocation10 + $0x178] sm:$0xff]  ;;  %p1919_p12 = pneg %p1918_p3 }
  0x77   : > { %583 = vmatpush.bf16.msra.mxu0 %v1301_v28  ;;  %v678_v58 = vld [vmem:[#allocation10 + $0x168] sm:$0xff]  ;;  %v681_v61 = vld [vmem:[#allocation10 + $0x180] sm:$0xff]  ;;  %v675_v0 = vld [vmem:[#allocation10 + $0x150] sm:$0xff] }
  0x78   : > { %596 = vmatpush.bf16.msra.mxu1 %v1305_v29  ;;  %v673_v62 = vld [vmem:[#allocation10 + $0x140] sm:$0xff]  ;;  %v674_v63 = vld [vmem:[#allocation10 + $0x148] sm:$0xff]  ;;  %v676_v1 = vld [vmem:[#allocation10 + $0x158] sm:$0xff]  ;;  %p1924_p10 = pnand %p1923_p8, %p1919_p12 }
  0x79   : > { %609 = vmatpush.bf16.msra.mxu2 %v1309_v30  ;;  %622 = vmatpush.bf16.msra.mxu3 %v1313_v31  ;;  %v669_v2 = vld [vmem:[#allocation10 + $0x120] sm:$0xff]  ;;  %v668_v3 = vld [vmem:[#allocation10 + $0x118] sm:$0xff]  ;;  %v670_v4 = vld [vmem:[#allocation10 + $0x128] sm:$0xff] }
  0x7a   : > { %v671_v5 = vld [vmem:[#allocation10 + $0x130] sm:$0xff]  ;;  %v664_v6 = vld [vmem:[#allocation10 + $0xf8] sm:$0xff]  ;;  %584 = vmatmul.bf16.vlgmr.msra.gmra.mxu0 %v373_v48  ;;  %v665_v8 = vld [vmem:[#allocation10 + $0x100] sm:$0xff] }
  0x7b   : > { %713 = vmatpush.msrb.mxu0 %v708_v32  ;;  %597 = vmatmul.bf16.vlgmr.msra.gmra.mxu1 %v373_v48  ;;  %v663_v7 = vld [vmem:[#allocation10 + $0xf0] sm:$0xff]  ;;  %v666_v9 = vld [vmem:[#allocation10 + $0x108] sm:$0xff]  ;;  %v660_v12 = vld [vmem:[#allocation10 + $0xd8] sm:$0xff] }
  0x7c   : > { %733 = vmatpush.msrb.mxu1 %v709_v33  ;;  %610 = vmatmul.bf16.vlgmr.msra.gmra.mxu2 %v373_v48  ;;  %v659_v10 = vld [vmem:[#allocation10 + $0xd0] sm:$0xff]  ;;  %v658_v11 = vld [vmem:[#allocation10 + $0xc8] sm:$0xff]  ;;  %v661_v13 = vld [vmem:[#allocation10 + $0xe0] sm:$0xff] }
  0x7d   : > { %753 = vmatpush.msrb.mxu2 %v710_v34  ;;  %773 = vmatpush.msrb.mxu3 %v711_v35  ;;  %v654_v14 = vld [vmem:[#allocation10 + $0xa8] sm:$0xff]  ;;  %v653_v15 = vld [vmem:[#allocation10 + $0xa0] sm:$0xff]  ;;  %v655_v16 = vld [vmem:[#allocation10 + $0xb0] sm:$0xff] }
  0x7e   : > { %714 = vmatpush.msrb.mxu0 %v703_v36  ;;  %734 = vmatpush.msrb.mxu1 %v704_v37  ;;  %v656_v17 = vld [vmem:[#allocation10 + $0xb8] sm:$0xff]  ;;  %v649_v18 = vld [vmem:[#allocation10 + $0x80] sm:$0xff]  ;;  %v650_v20 = vld [vmem:[#allocation10 + $0x88] sm:$0xff] }
  0x7f   : > { %754 = vmatpush.msrb.mxu2 %v705_v38  ;;  %774 = vmatpush.msrb.mxu3 %v706_v39  ;;  %v648_v19 = vld [vmem:[#allocation10 + $0x78] sm:$0xff]  ;;  %v651_v21 = vld [vmem:[#allocation10 + $0x90] sm:$0xff]  ;;  %v645_v24 = vld [vmem:[#allocation10 + $0x60] sm:$0xff] }
  0x80   : > { %715 = vmatpush.msrb.mxu0 %v698_v40  ;;  %735 = vmatpush.msrb.mxu1 %v699_v42  ;;  %v644_v22 = vld [vmem:[#allocation10 + $0x58] sm:$0xff]  ;;  %v643_v23 = vld [vmem:[#allocation10 + $0x50] sm:$0xff]  ;;  %v646_v25 = vld [vmem:[#allocation10 + $0x68] sm:$0xff] }
  0x81   : > { %755 = vmatpush.msrb.mxu2 %v700_v43  ;;  %775 = vmatpush.msrb.mxu3 %v701_v44  ;;  %v639_v26 = vld [vmem:[#allocation10 + $0x30] sm:$0xff]  ;;  %v638_v27 = vld [vmem:[#allocation10 + $0x28] sm:$0xff]  ;;  %v640_v28 = vld [vmem:[#allocation10 + $0x38] sm:$0xff] }
  0x82   : > { %716 = vmatpush.msrb.mxu0 %v693_v45  ;;  %736 = vmatpush.msrb.mxu1 %v694_v46  ;;  %v641_v29 = vld [vmem:[#allocation10 + $0x40] sm:$0xff]  ;;  %v634_v30 = vld [vmem:[#allocation10 + $0x8] sm:$0xff]  ;;  %v635_v32 = vld [vmem:[#allocation10 + $0x10] sm:$0xff] }
  0x83   : > { %756 = vmatpush.msrb.mxu2 %v695_v47  ;;  %776 = vmatpush.msrb.mxu3 %v696_v49  ;;  %v633_v31 = vld [vmem:[#allocation10] sm:$0xff]  ;;  %v636_v33 = vld [vmem:[#allocation10 + $0x18] sm:$0xff]  ;;  %v707_v38 = vld [vmem:[#allocation10 + $0x250] sm:$0xff] }
  0x84   : > { %717 = vmatpush.msrb.mxu0 %v688_v50  ;;  %737 = vmatpush.msrb.mxu1 %v689_v51  ;;  %v632_v34 = vld [vmem:[%s317_s10] sm:$0xff]  ;;  %v697_v43 = vld [vmem:[#allocation10 + $0x200] sm:$0xff] }
  0x85   : > { %757 = vmatpush.msrb.mxu2 %v690_v52  ;;  %777 = vmatpush.msrb.mxu3 %v691_v53  ;;  %v712_v35 = vld [vmem:[#allocation10 + $0x278] sm:$0xff]  ;;  %v702_v39 = vld [vmem:[#allocation10 + $0x228] sm:$0xff]  ;;  %v1596_v40 = vld [vmem:[#allocation11 + $0x30] sm:$0xff] }
  0x86   : > { %718 = vmatpush.msrb.mxu0 %v683_v54  ;;  %738 = vmatpush.msrb.mxu1 %v684_v55  ;;  %v1597_v36 = vld [vmem:[#allocation11 + $0x38] sm:$0xff]  ;;  %v1604_v42 = vld [vmem:[#allocation11 + $0x70] sm:$0xff]  ;;  %v682_v46 = vld [vmem:[#allocation10 + $0x188] sm:$0xff] }
  0x87   : > { %758 = vmatpush.msrb.mxu2 %v685_v56  ;;  %778 = vmatpush.msrb.mxu3 %v686_v57  ;;  %v1605_v37 = vld [vmem:[#allocation11 + $0x78] sm:$0xff]  ;;  %v687_v45 = vld [vmem:[#allocation10 + $0x1b0] sm:$0xff]  ;;  %v677_v47 = vld [vmem:[#allocation10 + $0x160] sm:$0xff] }
  0x88   : > { %719 = vmatpush.msrb.mxu0 %v678_v58  ;;  %739 = vmatpush.msrb.mxu1 %v679_v59  ;;  %v692_v44 = vld [vmem:[#allocation10 + $0x1d8] sm:$0xff]  ;;  %v667_v49 = vld [vmem:[#allocation10 + $0x110] sm:$0xff]  ;;  %v662_v50 = vld [vmem:[#allocation10 + $0xe8] sm:$0xff] }
  0x89   : > { %759 = vmatpush.msrb.mxu2 %v680_v60  ;;  %779 = vmatpush.msrb.mxu3 %v681_v61  ;;  %v657_v51 = vld [vmem:[#allocation10 + $0xc0] sm:$0xff]  ;;  %v652_v52 = vld [vmem:[#allocation10 + $0x98] sm:$0xff]  ;;  %v647_v53 = vld [vmem:[#allocation10 + $0x70] sm:$0xff] }
  0x8a   : > { %720 = vmatpush.msrb.mxu0 %v673_v62  ;;  %623 = vmatmul.bf16.vlgmr.msra.gmra.mxu3 %v373_v48  ;;  %v672_v48 = vld [vmem:[#allocation10 + $0x138] sm:$0xff]  ;;  %v642_v54 = vld [vmem:[#allocation10 + $0x48] sm:$0xff]  ;;  %v637_v55 = vld [vmem:[#allocation10 + $0x20] sm:$0xff] }
  0x8b   : > { %740 = vmatpush.msrb.mxu1 %v674_v63  ;;  %760 = vmatpush.msrb.mxu2 %v675_v0  ;;  %v1613_v56 = vld [vmem:[#allocation11 + $0xb8] sm:$0xff]  ;;  %v1595_v58 = vld [vmem:[#allocation11 + $0x28] sm:$0xff]  ;;  %v1612_v60 = vld [vmem:[#allocation11 + $0xb0] sm:$0xff] }
  0x8c   : > { %780 = vmatpush.msrb.mxu3 %v676_v1  ;;  %721 = vmatpush.msrb.mxu0 %v668_v3  ;;  %v1621_v57 = vld [vmem:[#allocation11 + $0xf8] sm:$0xff]  ;;  %v1603_v59 = vld [vmem:[#allocation11 + $0x68] sm:$0xff]  ;;  %v1620_v61 = vld [vmem:[#allocation11 + $0xf0] sm:$0xff] }
  0x8d   : > { %741 = vmatpush.msrb.mxu1 %v669_v2  ;;  %761 = vmatpush.msrb.mxu2 %v670_v4  ;;  %v1594_v62 = vld [vmem:[#allocation11 + $0x20] sm:$0xff]  ;;  %v1611_v0 = vld [vmem:[#allocation11 + $0xa8] sm:$0xff]  ;;  %v1593_v2 = vld [vmem:[#allocation11 + $0x18] sm:$0xff] }
  0x8e   : > { %781 = vmatpush.msrb.mxu3 %v671_v5  ;;  %722 = vmatpush.msrb.mxu0 %v663_v7  ;;  %v1602_v63 = vld [vmem:[#allocation11 + $0x60] sm:$0xff]  ;;  %v1619_v1 = vld [vmem:[#allocation11 + $0xe8] sm:$0xff]  ;;  %v1601_v3 = vld [vmem:[#allocation11 + $0x58] sm:$0xff] }
  0x8f   : > { %742 = vmatpush.msrb.mxu1 %v664_v6  ;;  %762 = vmatpush.msrb.mxu2 %v665_v8  ;;  %v1610_v4 = vld [vmem:[#allocation11 + $0xa0] sm:$0xff]  ;;  %v1592_v6 = vld [vmem:[#allocation11 + $0x10] sm:$0xff]  ;;  %v1609_v8 = vld [vmem:[#allocation11 + $0x98] sm:$0xff] }
  0x90   : > { %782 = vmatpush.msrb.mxu3 %v666_v9  ;;  %723 = vmatpush.msrb.mxu0 %v658_v11  ;;  %v1618_v5 = vld [vmem:[#allocation11 + $0xe0] sm:$0xff]  ;;  %v1600_v7 = vld [vmem:[#allocation11 + $0x50] sm:$0xff]  ;;  %v1617_v9 = vld [vmem:[#allocation11 + $0xd8] sm:$0xff] }
  0x91   : > { %743 = vmatpush.msrb.mxu1 %v659_v10  ;;  %763 = vmatpush.msrb.mxu2 %v660_v12  ;;  %v1591_v10 = vld [vmem:[#allocation11 + $0x8] sm:$0xff]  ;;  %v1608_v12 = vld [vmem:[#allocation11 + $0x90] sm:$0xff] }
  0x92   : > { %783 = vmatpush.msrb.mxu3 %v661_v13  ;;  %724 = vmatpush.msrb.mxu0 %v653_v15  ;;  %v1599_v11 = vld [vmem:[#allocation11 + $0x48] sm:$0xff]  ;;  %v1616_v13 = vld [vmem:[#allocation11 + $0xd0] sm:$0xff]  ;;  %v1598_v15 = vld [vmem:[#allocation11 + $0x40] sm:$0xff] }
  0x93   : > { %744 = vmatpush.msrb.mxu1 %v654_v14  ;;  %764 = vmatpush.msrb.mxu2 %v655_v16  ;;  %v1590_v14 = vld [vmem:[#allocation11] sm:$0xff]  ;;  %v1607_v16 = vld [vmem:[#allocation11 + $0x88] sm:$0xff] }
  0x94   : > { %784 = vmatpush.msrb.mxu3 %v656_v17  ;;  %725 = vmatpush.msrb.mxu0 %v648_v19  ;;  %v1615_v17 = vld [vmem:[#allocation11 + $0xc8] sm:$0xff]  ;;  %v1614_v19 = vld [vmem:[#allocation11 + $0xc0] sm:$0xff] }
  0x95   : > { %745 = vmatpush.msrb.mxu1 %v649_v18  ;;  %765 = vmatpush.msrb.mxu2 %v650_v20  ;;  %v1606_v18 = vld [vmem:[#allocation11 + $0x80] sm:$0xff] }
  0x96   : > { %785 = vmatpush.msrb.mxu3 %v651_v21  ;;  %726 = vmatpush.msrb.mxu0 %v643_v23 }
  0x97   : > { %746 = vmatpush.msrb.mxu1 %v644_v22  ;;  %766 = vmatpush.msrb.mxu2 %v645_v24 }
  0x98   : > { %786 = vmatpush.msrb.mxu3 %v646_v25  ;;  %727 = vmatpush.msrb.mxu0 %v638_v27 }
  0x99   : > { %747 = vmatpush.msrb.mxu1 %v639_v26  ;;  %767 = vmatpush.msrb.mxu2 %v640_v28  ;;  %v406_v26 = vld [vmem:[#allocation8] sm:$0xf] }
  0x9a   : > { %787 = vmatpush.msrb.mxu3 %v641_v29  ;;  %728 = vmatpush.msrb.mxu0 %v633_v31  ;;  %v408_v27 = vperm.slane %v406_v26, 0  ;;  %v409_v28 = vperm.slane %v406_v26, 1 }
  0x9b   : > { %748 = vmatpush.msrb.mxu1 %v634_v30  ;;  %768 = vmatpush.msrb.mxu2 %v635_v32 }
  0x9c   : > { %788 = vmatpush.msrb.mxu3 %v636_v33  ;;  %729 = vmatmul.f32.vlgmr.msrb.gmra.mxu0 %v632_v34  ;;  %v410_v33 = vperm.slane %v406_v26, 2 }
  0x9d   : > { %749 = vmatmul.f32.vlgmr.msrb.gmra.mxu1 %v632_v34  ;;  %769 = vmatmul.f32.vlgmr.msrb.gmra.mxu2 %v632_v34 }
  0x9e   : > { %789 = vmatmul.f32.vlgmr.msrb.gmra.mxu3 %v632_v34  ;;  %793 = vmatpush.msra.mxu0 %v712_v35  ;;  %v411_v35 = vperm.slane %v406_v26, 3 }
  0x9f   : > { %1077 = vmatpush.bf16.msra.mxu1 %v1597_v36  ;;  %1090 = vmatpush.bf16.msra.mxu2 %v1605_v37 }
  0xa0   : > { %794 = vmatpush.msra.mxu0 %v707_v38  ;;  %1103 = vmatpush.bf16.msra.mxu3 %v1613_v56 }
  0xa2   : > { %795 = vmatpush.msra.mxu0 %v702_v39 }
  0xa3   : > { %1078 = vmatpush.bf16.msra.mxu1 %v1596_v40  ;;  %1091 = vmatpush.bf16.msra.mxu2 %v1604_v42 }
  0xa4   : > { %796 = vmatpush.msra.mxu0 %v697_v43  ;;  %1104 = vmatpush.bf16.msra.mxu3 %v1612_v60 }
  0xa6   : > { %797 = vmatpush.msra.mxu0 %v692_v44 }
  0xa7   : > { %1079 = vmatpush.bf16.msra.mxu1 %v1595_v58  ;;  %1092 = vmatpush.bf16.msra.mxu2 %v1603_v59 }
  0xa8   : > { %798 = vmatpush.msra.mxu0 %v687_v45  ;;  %1105 = vmatpush.bf16.msra.mxu3 %v1611_v0 }
  0xaa   : > { %799 = vmatpush.msra.mxu0 %v682_v46 }
  0xab   : > { %1080 = vmatpush.bf16.msra.mxu1 %v1594_v62  ;;  %1093 = vmatpush.bf16.msra.mxu2 %v1602_v63 }
  0xac   : > { %800 = vmatpush.msra.mxu0 %v677_v47  ;;  %1106 = vmatpush.bf16.msra.mxu3 %v1610_v4 }
  0xae   : > { %801 = vmatpush.msra.mxu0 %v672_v48 }
  0xaf   : > { %1081 = vmatpush.bf16.msra.mxu1 %v1593_v2  ;;  %1094 = vmatpush.bf16.msra.mxu2 %v1601_v3 }
  0xb0   : > { %802 = vmatpush.msra.mxu0 %v667_v49  ;;  %1107 = vmatpush.bf16.msra.mxu3 %v1609_v8 }
  0xb2   : > { %803 = vmatpush.msra.mxu0 %v662_v50 }
  0xb3   : > { %1082 = vmatpush.bf16.msra.mxu1 %v1592_v6  ;;  %1095 = vmatpush.bf16.msra.mxu2 %v1600_v7 }
  0xb4   : > { %804 = vmatpush.msra.mxu0 %v657_v51  ;;  %1108 = vmatpush.bf16.msra.mxu3 %v1608_v12 }
  0xb6   : > { %805 = vmatpush.msra.mxu0 %v652_v52 }
  0xb7   : > { %1083 = vmatpush.bf16.msra.mxu1 %v1591_v10  ;;  %1096 = vmatpush.bf16.msra.mxu2 %v1599_v11 }
  0xb8   : > { %806 = vmatpush.msra.mxu0 %v647_v53  ;;  %1109 = vmatpush.bf16.msra.mxu3 %v1607_v16 }
  0xba   : > { %807 = vmatpush.msra.mxu0 %v642_v54 }
  0xbb   : > { %1084 = vmatpush.bf16.msra.mxu1 %v1590_v14  ;;  %1097 = vmatpush.bf16.msra.mxu2 %v1598_v15 }
  0xbc   : > { %808 = vmatpush.msra.mxu0 %v637_v55  ;;  %1110 = vmatpush.bf16.msra.mxu3 %v1606_v18 }
  0xbd   : > { %809 = vmatmul.f32.vlgmr.msra.gmra.mxu0 %v632_v34 }
  0xbe   : > { %1116 = vmatpush.bf16.msrb.mxu0 %v1621_v57 }
  0xc2   : > { %1117 = vmatpush.bf16.msrb.mxu0 %v1620_v61 }
  0xc6   : > { %1118 = vmatpush.bf16.msrb.mxu0 %v1619_v1 }
  0xca   : > { %1119 = vmatpush.bf16.msrb.mxu0 %v1618_v5 }
  0xce   : > { %1120 = vmatpush.bf16.msrb.mxu0 %v1617_v9 }
  0xd2   : > { %1121 = vmatpush.bf16.msrb.mxu0 %v1616_v13 }
  0xd6   : > { %1122 = vmatpush.bf16.msrb.mxu0 %v1615_v17 }
  0xda   : > { %1123 = vmatpush.bf16.msrb.mxu0 %v1614_v19 }
  0xf7   : > { %v585_v22 = vpop.f32.mrf.mxu0 }
  0xf8   : > { %v598_v20 = vpop.f32.mrf.mxu1  ;;  %v586_v30 = vadd.f32 %v585_v22, %v408_v27 }
  0xf9   : > { %v599_v31 = vadd.f32 %v598_v20, %v409_v28 }
  0xfa   : > { %v628_v34 = vmax.f32 %v586_v30, 0.0 }
  0xfb   : > { %v629_v36 = vmax.f32 %v599_v31, 0.0 }
  0xff   : > { %v611_v21 = vpop.f32.mrf.mxu2  ;;  %v587_v29 = vpop.f32.mrf.mxu0 }
 0x100   : > { %v600_v23 = vpop.f32.mrf.mxu1  ;;  %v612_v40 = vadd.f32 %v611_v21, %v410_v33 }
 0x102   : > { %v630_v46 = vmax.f32 %v612_v40, 0.0 }
 0x107   : > { %v613_v25 = vpop.f32.mrf.mxu2 }
 0x10d   : > { %v624_v24 = vpop.f32.mrf.mxu3 }
 0x10e   : > { %v625_v43 = vadd.f32 %v624_v24, %v411_v35 }
 0x110   : > { %v631_v47 = vmax.f32 %v625_v43, 0.0 }
 0x115   : > { %v626_v32 = vpop.f32.mrf.mxu3 }
 0x119   : > { %v730_v37 = vpop.f32.mrf.mxu0 }
 0x11a   : > { %v813_v38 = vmul.f32 %v730_v37, %v628_v34  ;;  %v750_v39 = vpop.f32.mrf.mxu1 }
 0x11b   : > { %v814_v42 = vmul.f32 %v750_v39, %v629_v36 }
 0x11c   : > { %v817_v44 = vpack.c.bf16 %v813_v38, %v813_v38 }
 0x11d   : > { %v818_v45 = vpack.c.bf16 %v814_v42, %v814_v42 }
 0x11e   : > { %1085 = vmatmul.bf16.vlgmr.msra.gmra.mxu1 %v817_v44 }
 0x11f   : > { %1098 = vmatmul.bf16.vlgmr.msra.gmra.mxu2 %v818_v45 }
 0x120   : > { %v770_v48 = vpop.f32.mrf.mxu2 }
 0x121   : > { %v815_v49 = vmul.f32 %v770_v48, %v630_v46  ;;  %v790_v50 = vpop.f32.mrf.mxu3 }
 0x122   : > { %v816_v51 = vmul.f32 %v790_v50, %v631_v47 }
 0x123   : > { %v819_v52 = vpack.c.bf16 %v815_v49, %v815_v49 }
 0x124   : > { %v820_v53 = vpack.c.bf16 %v816_v51, %v816_v51 }
 0x125   : > { %1111 = vmatmul.bf16.vlgmr.msra.gmra.mxu3 %v819_v52 }
 0x126   : > { %1124 = vmatmul.bf16.vlgmr.msrb.gmra.mxu0 %v820_v53 }
 0x13a   : > { %v810_v54 = vpop.f32.mrf.mxu0 }
 0x19b   : > { %v1086_v55 = vpop.f32.mrf.mxu1 }
 0x19c   : > { %v1087_v59 = vadd.f32 %v1086_v55, %v810_v54 }
 0x1a2   : > { %v1099_v56 = vpop.f32.mrf.mxu2 }
 0x1a3   : > { %v1125_v57 = vpop.f32.mrf.mxu0  ;;  %v1088_v58 = vpop.f32.mrf.mxu1  ;;  %v1100_v60 = vadd.f32 %v1099_v56, %v1087_v59 }
 0x1a8   : > { %v1112_v61 = vpop.f32.mrf.mxu3 }
 0x1a9   : > { %v1113_v62 = vadd.f32 %v1112_v61, %v1100_v60 }
 0x1aa   : > { %v1101_v63 = vpop.f32.mrf.mxu2 }
 0x1ab   : > { %v1126_v0 = vadd.f32 %v1125_v57, %v1113_v62  ;;  %v1127_v1 = vpop.f32.mrf.mxu0 }
 0x1ad   : > { %vm1129_vm0 = vcmp.eq.f32.partialorder %v1126_v0, 0.0 }
 0x1ae   : > { %v1130_v2 = vsel %vm1129_vm0, %v2200_v41, %v1126_v0 }
 0x1af   : > { %1131 = vst [vmem:[%s371_s19] sm:$0xff] %v1130_v2 }
 0x1b0   : > { %v1114_v3 = vpop.f32.mrf.mxu3 }
 0x1b1   : > { %1927 = shalt.err (!%p1924_p10)
}
 0x1b2   : > { %1642 = dma.vmem_to_hbm [thread:$0]  (%p2116_p4), %s1146_s30, 128, %s1148_s18, %s1133_s28  }
 0x1b3 PF: > { %s1159_s2 = sand.u32 1, %s1970_s21   ;;  %p2264_p11 = scmp.ge.s32.totalorder %s1982_s24, 2 }
 0x1b4   : > { %s1160_s26 = scalar_lea.sflag [#allocation4], %s1159_s2 }
 0x1b5   : > { %p1665_p5 = pnand %p2264_p11, %p2120_p6 }
 0x1b7   : > { %p1666_p13 = pneg %p1665_p5 }
 0x1b9   : > { %1965 = dma.done.wait (%p1666_p13), %s1160_s26, 128  }
 0x1ba   : > { %1967 = vsyncadd (%p1666_p13), %s1160_s26, 4294967168  ;;  %s2265_s17 = sld [smem:[#allocation20_spill]]  ;;  %p24_p0 = scmp.ge.s32.totalorder %s2090_s15, 4  }
 0x1bb   : > { %s2266_s21 = smov %s1974_s22  ;;  %s2267_s22 = smov %s1978_s23 }
 0x1bc   : > { %s2269_s24 = smov %s2090_s15  ;;  %26 = sbr.rel (!%p24_p0) target bundleno = 14 (0xe), region = 118 }
 0x1c0   : > { %s2268_s23 = smov %s2265_s17 }
 0x1c1   :  { %1166 = vsyncpa [#allocation3], 1 }
 0x1c2   :  { %1168 = vsyncpa [#allocation3 + $0x1], 1 }
 0x1c3   :  { %1169 = vsyncpa [#allocation6], 1 }
 0x1c4   :  { %1171 = vsyncpa [#allocation6 + $0x1], 1 }
 0x1c5   :  { %1172 = vsyncpa [#allocation9], 1 }
 0x1c6   :  { %1173 = vsyncpa [#allocation12], 1 }
 0x1c7   :  { %1174 = vsyncpa [#allocation4], 1 }
 0x1c8   :  { %1176 = vsyncpa [#allocation4 + $0x1], 1 }

</bundles_post_ra>
